<compile_context>
chip_gen: v5e
topology: v5e:2x2
jax: 0.10.0
libtpu: 0.0.40
codegen_flags: <defaults>
</compile_context>

<pallas_src>
import functools

import jax
import jax.numpy as jnp
from jax.experimental import pallas as pl
from jax.experimental.pallas import tpu as pltpu

_EPS = 1e-5
_TILE_M = 1024                      # lane tile used only when B*M exceeds it
_VMEM_LIMIT = 48 * 1024 * 1024      # <= v7x 64 MiB physical; plenty on v5e/v6e

CFG = dict(
    n_instruments=4,
    n_input_audio_channels=2,
    encoderdecoder_channels=[8, 16],
    encoder_activation="leaky_relu",
    encoder_filter_size=4, encoder_stride=2, encoder_padding=1,
    decoder_activations=["relu", "sigmoid"],
    decoder_filter_size=4, decoder_stride=2, decoder_padding=1,
    decoders_with_skip_connection=[True, True],
    control_embedding_dimension=8,
)


# ---------------------------------------------------------------------------
# Pallas kernels
# ---------------------------------------------------------------------------
def _activation(name, x):
    if name == "relu":
        return jnp.maximum(x, 0.0)
    if name == "leaky_relu":
        return jnp.where(x >= 0.0, x, 0.01 * x)
    if name == "sigmoid":
        return jax.nn.sigmoid(x)
    if name == "tanh":
        return jnp.tanh(x)
    raise NotImplementedError(name)


def _enc_block_kernel(p_ref, w_ref, aff_ref, o_ref, *,
                      activation, n_batch, m_per_b, tile):
    """(Cout,K)bf16 @ (K,tile)bf16 -> f32; per-(batch,channel) affine; activation."""
    y = jax.lax.dot_general(
        w_ref[...], p_ref[...],
        dimension_numbers=(((1,), (0,)), ((), ())),
        preferred_element_type=jnp.float32)                 # (Cout, tile), lane-dense
    aff = aff_ref[...].astype(jnp.float32)                  # (Cout, 2B) = [gamma | bias]
    g = aff[:, n_batch - 1:n_batch]                         # start from last batch
    b = aff[:, 2 * n_batch - 1:2 * n_batch]
    if n_batch > 1:
        # Lane index -> batch segment via (B-1) selects (lanes are batch-major).
        lane = jax.lax.broadcasted_iota(jnp.int32, y.shape, 1) + pl.program_id(0) * tile
        for bb in range(n_batch - 2, -1, -1):
            sel = lane < (bb + 1) * m_per_b
            g = jnp.where(sel, aff[:, bb:bb + 1], g)
            b = jnp.where(sel, aff[:, n_batch + bb:n_batch + bb + 1], b)
    o_ref[...] = _activation(activation, y * g + b).astype(o_ref.dtype)


def _dec_block_kernel(p_ref, w_ref, s_ref, o_ref, *, activation):
    """(4*Cout,K)bf16 @ (K,tile)bf16 -> f32; + per-channel shift; activation."""
    y = jax.lax.dot_general(
        w_ref[...], p_ref[...],
        dimension_numbers=(((1,), (0,)), ((), ())),
        preferred_element_type=jnp.float32)
    o_ref[...] = _activation(activation, y + s_ref[...]).astype(o_ref.dtype)


# ---------------------------------------------------------------------------
# pallas_call wrappers (single call per layer; lane tiling only for large B*M)
# ---------------------------------------------------------------------------
def _lane_tiles(bm):
    """Return (tile, n_tiles, bm_padded). No padding when the block is the full array."""
    if bm <= _TILE_M:
        return bm, 1, bm
    bm_pad = ((bm + _TILE_M - 1) // _TILE_M) * _TILE_M
    return _TILE_M, bm_pad // _TILE_M, bm_pad


def _compiler_params():
    return pltpu.CompilerParams(
        dimension_semantics=("parallel",),
        vmem_limit_bytes=_VMEM_LIMIT)


def _run_encoder_gemm(pat, w_t, aff, act, *, n_batch, m_per_b, out_dtype):
    K, BM = pat.shape
    cmat = w_t.shape[0]
    tile, ntiles, bm_pad = _lane_tiles(BM)
    if bm_pad != BM:
        pat = jnp.pad(pat, ((0, 0), (0, bm_pad - BM)))
    out = pl.pallas_call(
        functools.partial(_enc_block_kernel, activation=act, n_batch=n_batch,
                          m_per_b=m_per_b, tile=tile),
        grid=(ntiles,),
        in_specs=[
            pl.BlockSpec((K, tile), lambda t: (0, t)),
            pl.BlockSpec((cmat, K), lambda t: (0, 0)),          # resident weight
            pl.BlockSpec((cmat, 2 * n_batch), lambda t: (0, 0)),  # resident packed affine
        ],
        out_specs=pl.BlockSpec((cmat, tile), lambda t: (0, t)),
        out_shape=jax.ShapeDtypeStruct((cmat, bm_pad), out_dtype),
        compiler_params=_compiler_params(),
    )(pat, w_t, aff)
    return out if bm_pad == BM else out[:, :BM]


def _run_decoder_gemm(pat, w_t, shift, act, out_dtype):
    K, BM = pat.shape
    cmat = w_t.shape[0]
    tile, ntiles, bm_pad = _lane_tiles(BM)
    if bm_pad != BM:
        pat = jnp.pad(pat, ((0, 0), (0, bm_pad - BM)))
    out = pl.pallas_call(
        functools.partial(_dec_block_kernel, activation=act),
        grid=(ntiles,),
        in_specs=[
            pl.BlockSpec((K, tile), lambda t: (0, t)),
            pl.BlockSpec((cmat, K), lambda t: (0, 0)),
            pl.BlockSpec((cmat, 1), lambda t: (0, 0)),
        ],
        out_specs=pl.BlockSpec((cmat, tile), lambda t: (0, t)),
        out_shape=jax.ShapeDtypeStruct((cmat, bm_pad), out_dtype),
        compiler_params=_compiler_params(),
    )(pat, w_t, shift)
    return out if bm_pad == BM else out[:, :BM]


# ---------------------------------------------------------------------------
# Layer glue.  Activations are kept channel-major (C, B, H, W) bf16 end to end,
# so patch extraction is a pure stack+reshape (no B<->C transpose per layer).
# ---------------------------------------------------------------------------
def _encoder_layer(x, L, z):
    C, B, H, W = x.shape
    k, s, pad, cout = L["k"], L["s"], L["pad"], L["cout"]
    Ho = (H + 2 * pad - k) // s + 1
    Wo = (W + 2 * pad - k) // s + 1
    xp = jnp.pad(x.astype(jnp.bfloat16), ((0, 0), (0, 0), (pad, pad), (pad, pad)))
    cols = []
    for dy in range(k):
        for dx in range(k):
            cols.append(jax.lax.slice(
                xp, (0, 0, dy, dx),
                (C, B, dy + s * (Ho - 1) + 1, dx + s * (Wo - 1) + 1),
                (1, 1, s, s)))
    pat = jnp.stack(cols, axis=0).reshape(k * k * C, B * Ho * Wo)    # (K, B*M) bf16

    # FiLM linear hoisted out of the kernel; folded with the BN shift into one
    # packed per-(batch,channel) affine operand: [gamma | gamma*shift+beta].
    film = z @ L["film_w"] + L["film_b"]                              # (B, 2*Cout)
    gamma, beta = film[:, :cout], film[:, cout:]
    aff = jnp.concatenate(
        [gamma.T, (gamma * L["shift"][None, :] + beta).T], axis=1
    ).astype(jnp.float32)                                             # (Cout, 2B)

    out = _run_encoder_gemm(pat, L["w_t"], aff, L["act"],
                            n_batch=B, m_per_b=Ho * Wo,
                            out_dtype=jnp.bfloat16)                   # (Cout, B*M) bf16
    return out.reshape(cout, B, Ho, Wo)


def _decoder_layer(x, skip_x, L, out_dtype):
    if L["skip"]:
        x = jnp.concatenate([x, skip_x], axis=0)          # torch.cat(dim=1) in CBHW
    C, B, H, W = x.shape
    cout = L["cout"]
    Hs, Ws = H + 1, W + 1
    xp = jnp.pad(x.astype(jnp.bfloat16), ((0, 0), (0, 0), (1, 1), (1, 1)))
    cols = []
    for a in range(2):
        for b in range(2):
            cols.append(jax.lax.slice(xp, (0, 0, a, b), (C, B, a + Hs, b + Ws)))
    pat = jnp.stack(cols, axis=0).reshape(4 * C, B * Hs * Ws)         # (4*C, B*Ms) bf16

    G = _run_decoder_gemm(pat, L["w_t"], L["shift4"], L["act"], out_dtype)
    G = G.reshape(2, 2, cout, B, Hs, Ws)                  # (ry, rx, Cout, B, Hs, Ws)

    # Single-pass phase interleave:
    #   y[:, :, 2u+ry, 2v+rx] = G[ry, rx, :, :, u+ry, v+rx]
    # Reverse the phase axes, move them after the spatial axes, reshape, slice once.
    Z = jnp.transpose(G[::-1, ::-1], (2, 3, 4, 0, 5, 1)).reshape(cout, B, 2 * Hs, 2 * Ws)
    return Z[:, :, 1:2 * H + 1, 1:2 * W + 1]              # (Cout, B, 2H, 2W)


def conditioned_unet_forward(params, X_nchw, condition):
    # control_type == 'embedding': argmax over condition logits, then embedding lookup.
    idx = jnp.argmax(condition, axis=1)
    z = params["embedding"][idx]                                      # (B, D)
    x = jnp.transpose(X_nchw, (1, 0, 2, 3)).astype(jnp.bfloat16)      # CBHW bf16
    skips = []
    for L in params["encoder"]:
        x = _encoder_layer(x, L, z)
        skips.append(x)
    n_dec = len(params["decoder"])
    for i, (skip_x, L) in enumerate(zip(skips[::-1], params["decoder"])):
        out_dtype = jnp.float32 if i == n_dec - 1 else jnp.bfloat16
        x = _decoder_layer(x, skip_x, L, out_dtype)
    return jnp.transpose(x, (1, 0, 2, 3))                             # NCHW f32


# ---------------------------------------------------------------------------
# Parameters: raw (PyTorch-style) init, kernel-ready fold, and a pure-JAX reference
# ---------------------------------------------------------------------------
def init_params(key, cfg):
    keys = iter(jax.random.split(key, 64))

    def nrm(shape, scale=0.1):
        return scale * jax.random.normal(next(keys), shape, dtype=jnp.float32)

    D = cfg["control_embedding_dimension"]
    params = {"embedding": nrm((cfg["n_instruments"], D), 1.0)}

    k = cfg["encoder_filter_size"]
    enc_in = [cfg["n_input_audio_channels"]] + cfg["encoderdecoder_channels"][:-1]
    enc_out = cfg["encoderdecoder_channels"]
    params["encoder"] = [dict(
        conv_w=nrm((cout, cin, k, k)), conv_b=nrm((cout,)),
        bn_w=1.0 + nrm((cout,)), bn_b=nrm((cout,)),
        bn_mean=jnp.zeros((cout,), jnp.float32), bn_var=jnp.ones((cout,), jnp.float32),
        film_w=nrm((D, 2 * cout)),
        film_b=jnp.concatenate([1.0 + nrm((cout,)), nrm((cout,))]))
        for cin, cout in zip(enc_in, enc_out)]

    kd = cfg["decoder_filter_size"]
    dec_in = cfg["encoderdecoder_channels"][::-1]
    dec_out = enc_in[::-1]
    decoders = []
    for cin, cout, skip in zip(dec_in, dec_out, cfg["decoders_with_skip_connection"]):
        cin_eff = 2 * cin if skip else cin
        decoders.append(dict(
            convt_w=nrm((cin_eff, cout, kd, kd)), conv_b=nrm((cout,)),
            bn_w=1.0 + nrm((cout,)), bn_b=nrm((cout,)),
            bn_mean=jnp.zeros((cout,), jnp.float32), bn_var=jnp.ones((cout,), jnp.float32)))
    params["decoder"] = decoders
    return params


def prepare_params(raw, cfg):
    """Fold BN scale into bf16 GEMM weights; phase-decompose the transposed convs."""
    prep = {"embedding": raw["embedding"]}

    k, s, pad = cfg["encoder_filter_size"], cfg["encoder_stride"], cfg["encoder_padding"]
    enc = []
    for L in raw["encoder"]:
        cout, cin = L["conv_w"].shape[0], L["conv_w"].shape[1]
        bn_scale = L["bn_w"] / jnp.sqrt(L["bn_var"] + _EPS)
        shift = (L["conv_b"] - L["bn_mean"]) * bn_scale + L["bn_b"]
        w_mat = jnp.transpose(L["conv_w"], (2, 3, 1, 0)).reshape(k * k * cin, cout)
        w_t = (w_mat * bn_scale[None, :]).T.astype(jnp.bfloat16)     # (Cout, K)
        enc.append(dict(w_t=w_t, shift=shift, film_w=L["film_w"], film_b=L["film_b"],
                        cout=cout, k=k, s=s, pad=pad, act=cfg["encoder_activation"]))
    prep["encoder"] = enc

    kd, sd, pd = cfg["decoder_filter_size"], cfg["decoder_stride"], cfg["decoder_padding"]
    assert (kd, sd, pd) == (4, 2, 1), "phase decomposition below assumes k=4, s=2, p=1"
    tap = jnp.array([[3, 1], [2, 0]], dtype=jnp.int32)   # [output phase r, window offset a]
    dec = []
    for L, act, skip in zip(raw["decoder"], cfg["decoder_activations"],
                            cfg["decoders_with_skip_connection"]):
        wt = L["convt_w"]                                             # (Cin_eff, Cout, 4, 4)
        cin_eff, cout = wt.shape[0], wt.shape[1]
        bn_scale = L["bn_w"] / jnp.sqrt(L["bn_var"] + _EPS)
        shift = (L["conv_b"] - L["bn_mean"]) * bn_scale + L["bn_b"]
        w_sel = wt[:, :, tap, :]                                      # (ci, co, ry, a, kx)
        w_sel = w_sel[:, :, :, :, tap]                                # (ci, co, ry, a, rx, b)
        w_sel = jnp.transpose(w_sel, (3, 5, 0, 2, 4, 1))              # (a, b, ci, ry, rx, co)
        w_mat = w_sel.reshape(4 * cin_eff, 4 * cout)
        scale4 = jnp.tile(bn_scale, 4)
        w_t = (w_mat * scale4[None, :]).T.astype(jnp.bfloat16)        # (4*Cout, 4*Cin_eff)
        dec.append(dict(w_t=w_t, shift4=jnp.tile(shift, 4).reshape(4 * cout, 1),
                        cout=cout, act=act, skip=skip))
    prep["decoder"] = dec
    return prep


def reference_forward(raw, cfg, X, condition):
    """Pure-JAX (lax.conv) float32 reference with identical semantics."""
    idx = jnp.argmax(condition, axis=1)
    z = raw["embedding"][idx]
    x = X.astype(jnp.float32)
    s, pad = cfg["encoder_stride"], cfg["encoder_padding"]

    def bn(x, L):
        rs = lambda v: v.reshape(1, -1, 1, 1)
        return ((x - rs(L["bn_mean"])) / jnp.sqrt(rs(L["bn_var"]) + _EPS)
                * rs(L["bn_w"]) + rs(L["bn_b"]))

    skips = []
    for L in raw["encoder"]:
        cout = L["conv_w"].shape[0]
        x = jax.lax.conv_general_dilated(
            x, L["conv_w"], window_strides=(s, s), padding=((pad, pad), (pad, pad)),
            dimension_numbers=("NCHW", "OIHW", "NCHW"))
        x = bn(x + L["conv_b"].reshape(1, -1, 1, 1), L)
        film = z @ L["film_w"] + L["film_b"]
        gamma, beta = film[:, :cout], film[:, cout:]
        x = _activation(cfg["encoder_activation"],
                        x * gamma[:, :, None, None] + beta[:, :, None, None])
        skips.append(x)

    kd, sd, pd = cfg["decoder_filter_size"], cfg["decoder_stride"], cfg["decoder_padding"]
    for skip_x, L, act, skip in zip(skips[::-1], raw["decoder"],
                                    cfg["decoder_activations"],
                                    cfg["decoders_with_skip_connection"]):
        if skip:
            x = jnp.concatenate([x, skip_x], axis=1)
        w = jnp.transpose(L["convt_w"][:, :, ::-1, ::-1], (1, 0, 2, 3))
        ep = kd - 1 - pd
        x = jax.lax.conv_general_dilated(
            x, w, window_strides=(1, 1), padding=((ep, ep), (ep, ep)),
            lhs_dilation=(sd, sd), dimension_numbers=("NCHW", "OIHW", "NCHW"))
        x = _activation(act, bn(x + L["conv_b"].reshape(1, -1, 1, 1), L))
    return x


if __name__ == "__main__":
    key = jax.random.PRNGKey(0)
    kp, kx, kc = jax.random.split(key, 3)
    raw = init_params(kp, CFG)
    params = prepare_params(raw, CFG)

    B, Cin, H, W = 2, CFG["n_input_audio_channels"], 16, 16
    X = jax.random.normal(kx, (B, Cin, H, W), dtype=jnp.float32)
    condition = jax.random.normal(kc, (B, CFG["n_instruments"]), dtype=jnp.float32)

    fwd = jax.jit(lambda x, c: conditioned_unet_forward(params, x, c))
    out = fwd(X, condition)
    jax.block_until_ready(out)

    ref = reference_forward(raw, CFG, X, condition)
    err = float(jnp.max(jnp.abs(out - ref)))

    assert out.shape == (B, Cin, H, W), out.shape
    assert bool(jnp.all(jnp.isfinite(out)))
    assert err < 5e-2, f"mismatch vs reference: {err}"
    print("KERNEL_OK")
</pallas_src>

<mosaic_0001>
module attributes {stable_mosaic.version = 11 : i64} {
  func.func @_enc_block_kernel(%arg0: i32, %arg1: memref<32x128xbf16, #tpu.memory_space<vmem>>, %arg2: memref<8x32xbf16, #tpu.memory_space<vmem>>, %arg3: memref<8x4xf32, #tpu.memory_space<vmem>>, %arg4: memref<8x128xbf16, #tpu.memory_space<vmem>>) attributes {dimension_semantics = [#tpu.dimension_semantics<parallel>], iteration_bounds = array<i64: 1>, scalar_prefetch = 0 : i64, scratch_operands = 0 : i64, tpu.core_type = #tpu.core_type<tc>, window_params = [{transform_indices = @transform_0, window_bounds = array<i64: 32, 128>}, {pipeline_mode = #tpu.pipeline_mode<synchronous>, transform_indices = @transform_1, window_bounds = array<i64: 8, 32>}, {pipeline_mode = #tpu.pipeline_mode<synchronous>, transform_indices = @transform_2, window_bounds = array<i64: 8, 4>}, {transform_indices = @transform_3, window_bounds = array<i64: 8, 128>}]} {
    %c0 = arith.constant 0 : index
    %c0_0 = arith.constant 0 : index
    %0 = vector.load %arg2[%c0, %c0_0] : memref<8x32xbf16, #tpu.memory_space<vmem>>, vector<8x32xbf16>
    %c0_1 = arith.constant 0 : index
    %c0_2 = arith.constant 0 : index
    %1 = vector.load %arg1[%c0_1, %c0_2] : memref<32x128xbf16, #tpu.memory_space<vmem>>, vector<32x128xbf16>
    %cst = arith.constant dense<0.000000e+00> : vector<8x128xf32>
    %2 = tpu.matmul %0, %1, %cst {dimension_numbers = #tpu.dot_dimension_numbers<[1], [0], [0], [1], [0, 0, 1, 1], [], []>} : vector<8x32xbf16>, vector<32x128xbf16>, vector<8x128xf32> -> vector<8x128xf32>
    %c0_3 = arith.constant 0 : index
    %c0_4 = arith.constant 0 : index
    %3 = vector.load %arg3[%c0_3, %c0_4] : memref<8x4xf32, #tpu.memory_space<vmem>>, vector<8x4xf32>
    %4 = vector.extract_strided_slice %3 {offsets = [0, 1], sizes = [8, 1], strides = [1, 1]} : vector<8x4xf32> to vector<8x1xf32>
    %5 = vector.extract_strided_slice %3 {offsets = [0, 3], sizes = [8, 1], strides = [1, 1]} : vector<8x4xf32> to vector<8x1xf32>
    %6 = tpu.iota {dimensions = array<i32: 1>} : vector<8x128xi32>
    %c128_i32 = arith.constant 128 : i32
    %7 = arith.muli %arg0, %c128_i32 : i32
    %8 = vector.broadcast %7 : i32 to vector<8x128xi32>
    %9 = arith.addi %6, %8 : vector<8x128xi32>
    %c64_i32 = arith.constant 64 : i32
    %10 = vector.broadcast %c64_i32 : i32 to vector<8x128xi32>
    %11 = arith.cmpi slt, %9, %10 : vector<8x128xi32>
    %12 = vector.extract_strided_slice %3 {offsets = [0, 0], sizes = [8, 1], strides = [1, 1]} : vector<8x4xf32> to vector<8x1xf32>
    %13 = vector.shape_cast %12 : vector<8x1xf32> to vector<8x1xf32>
    %14 = vector.broadcast %13 : vector<8x1xf32> to vector<8x128xf32>
    %15 = vector.shape_cast %4 : vector<8x1xf32> to vector<8x1xf32>
    %16 = vector.broadcast %15 : vector<8x1xf32> to vector<8x128xf32>
    %17 = arith.select %11, %14, %16 : vector<8x128xi1>, vector<8x128xf32>
    %18 = vector.extract_strided_slice %3 {offsets = [0, 2], sizes = [8, 1], strides = [1, 1]} : vector<8x4xf32> to vector<8x1xf32>
    %19 = vector.shape_cast %18 : vector<8x1xf32> to vector<8x1xf32>
    %20 = vector.broadcast %19 : vector<8x1xf32> to vector<8x128xf32>
    %21 = vector.shape_cast %5 : vector<8x1xf32> to vector<8x1xf32>
    %22 = vector.broadcast %21 : vector<8x1xf32> to vector<8x128xf32>
    %23 = arith.select %11, %20, %22 : vector<8x128xi1>, vector<8x128xf32>
    %24 = arith.mulf %2, %17 : vector<8x128xf32>
    %25 = arith.addf %24, %23 : vector<8x128xf32>
    %cst_5 = arith.constant 0.000000e+00 : f32
    %26 = vector.broadcast %cst_5 : f32 to vector<8x128xf32>
    %27 = arith.cmpf oge, %25, %26 : vector<8x128xf32>
    %cst_6 = arith.constant 0.00999999977 : f32
    %28 = vector.broadcast %cst_6 : f32 to vector<8x128xf32>
    %29 = arith.mulf %28, %25 : vector<8x128xf32>
    %30 = arith.select %27, %25, %29 : vector<8x128xi1>, vector<8x128xf32>
    %31 = arith.truncf %30 : vector<8x128xf32> to vector<8x128xbf16>
    %c0_7 = arith.constant 0 : index
    %c0_8 = arith.constant 0 : index
    %32 = vector.load %arg4[%c0_7, %c0_8] : memref<8x128xbf16, #tpu.memory_space<vmem>>, vector<8x128xbf16>
    tpu.vector_store %arg4[%c0_7, %c0_8], %31 {strides = array<i32>} : memref<8x128xbf16, #tpu.memory_space<vmem>>, vector<8x128xbf16>,
    return
  }
  func.func @transform_0(%arg0: i32) -> (i32, i32) {
    %c0_i32 = arith.constant 0 : i32
    %c0_i32_0 = arith.constant 0 : i32
    return %c0_i32, %arg0 : i32, i32
  }
  func.func @transform_1(%arg0: i32) -> (i32, i32) {
    %c0_i32 = arith.constant 0 : i32
    %c0_i32_0 = arith.constant 0 : i32
    %c0_i32_1 = arith.constant 0 : i32
    return %c0_i32, %c0_i32_0 : i32, i32
  }
  func.func @transform_2(%arg0: i32) -> (i32, i32) {
    %c0_i32 = arith.constant 0 : i32
    %c0_i32_0 = arith.constant 0 : i32
    %c0_i32_1 = arith.constant 0 : i32
    return %c0_i32, %c0_i32_0 : i32, i32
  }
  func.func @transform_3(%arg0: i32) -> (i32, i32) {
    %c0_i32 = arith.constant 0 : i32
    %c0_i32_0 = arith.constant 0 : i32
    return %c0_i32, %arg0 : i32, i32
  }
}

module attributes {stable_mosaic.version = 11 : i64} {
  func.func @_enc_block_kernel(%arg0: i32, %arg1: memref<128x32xbf16, #tpu.memory_space<vmem>>, %arg2: memref<16x128xbf16, #tpu.memory_space<vmem>>, %arg3: memref<16x4xf32, #tpu.memory_space<vmem>>, %arg4: memref<16x32xbf16, #tpu.memory_space<vmem>>) attributes {dimension_semantics = [#tpu.dimension_semantics<parallel>], iteration_bounds = array<i64: 1>, scalar_prefetch = 0 : i64, scratch_operands = 0 : i64, tpu.core_type = #tpu.core_type<tc>, window_params = [{transform_indices = @transform_0, window_bounds = array<i64: 128, 32>}, {pipeline_mode = #tpu.pipeline_mode<synchronous>, transform_indices = @transform_1, window_bounds = array<i64: 16, 128>}, {pipeline_mode = #tpu.pipeline_mode<synchronous>, transform_indices = @transform_2, window_bounds = array<i64: 16, 4>}, {transform_indices = @transform_3, window_bounds = array<i64: 16, 32>}]} {
    %c0 = arith.constant 0 : index
    %c0_0 = arith.constant 0 : index
    %0 = vector.load %arg2[%c0, %c0_0] : memref<16x128xbf16, #tpu.memory_space<vmem>>, vector<16x128xbf16>
    %c0_1 = arith.constant 0 : index
    %c0_2 = arith.constant 0 : index
    %1 = vector.load %arg1[%c0_1, %c0_2] : memref<128x32xbf16, #tpu.memory_space<vmem>>, vector<128x32xbf16>
    %cst = arith.constant dense<0.000000e+00> : vector<16x32xf32>
    %2 = tpu.matmul %0, %1, %cst {dimension_numbers = #tpu.dot_dimension_numbers<[1], [0], [0], [1], [0, 0, 1, 1], [], []>} : vector<16x128xbf16>, vector<128x32xbf16>, vector<16x32xf32> -> vector<16x32xf32>
    %c0_3 = arith.constant 0 : index
    %c0_4 = arith.constant 0 : index
    %3 = vector.load %arg3[%c0_3, %c0_4] : memref<16x4xf32, #tpu.memory_space<vmem>>, vector<16x4xf32>
    %4 = vector.extract_strided_slice %3 {offsets = [0, 1], sizes = [16, 1], strides = [1, 1]} : vector<16x4xf32> to vector<16x1xf32>
    %5 = vector.extract_strided_slice %3 {offsets = [0, 3], sizes = [16, 1], strides = [1, 1]} : vector<16x4xf32> to vector<16x1xf32>
    %6 = tpu.iota {dimensions = array<i32: 1>} : vector<16x32xi32>
    %c32_i32 = arith.constant 32 : i32
    %7 = arith.muli %arg0, %c32_i32 : i32
    %8 = vector.broadcast %7 : i32 to vector<16x32xi32>
    %9 = arith.addi %6, %8 : vector<16x32xi32>
    %c16_i32 = arith.constant 16 : i32
    %10 = vector.broadcast %c16_i32 : i32 to vector<16x32xi32>
    %11 = arith.cmpi slt, %9, %10 : vector<16x32xi32>
    %12 = vector.extract_strided_slice %3 {offsets = [0, 0], sizes = [16, 1], strides = [1, 1]} : vector<16x4xf32> to vector<16x1xf32>
    %13 = vector.shape_cast %12 : vector<16x1xf32> to vector<16x1xf32>
    %14 = vector.broadcast %13 : vector<16x1xf32> to vector<16x32xf32>
    %15 = vector.shape_cast %4 : vector<16x1xf32> to vector<16x1xf32>
    %16 = vector.broadcast %15 : vector<16x1xf32> to vector<16x32xf32>
    %17 = arith.select %11, %14, %16 : vector<16x32xi1>, vector<16x32xf32>
    %18 = vector.extract_strided_slice %3 {offsets = [0, 2], sizes = [16, 1], strides = [1, 1]} : vector<16x4xf32> to vector<16x1xf32>
    %19 = vector.shape_cast %18 : vector<16x1xf32> to vector<16x1xf32>
    %20 = vector.broadcast %19 : vector<16x1xf32> to vector<16x32xf32>
    %21 = vector.shape_cast %5 : vector<16x1xf32> to vector<16x1xf32>
    %22 = vector.broadcast %21 : vector<16x1xf32> to vector<16x32xf32>
    %23 = arith.select %11, %20, %22 : vector<16x32xi1>, vector<16x32xf32>
    %24 = arith.mulf %2, %17 : vector<16x32xf32>
    %25 = arith.addf %24, %23 : vector<16x32xf32>
    %cst_5 = arith.constant 0.000000e+00 : f32
    %26 = vector.broadcast %cst_5 : f32 to vector<16x32xf32>
    %27 = arith.cmpf oge, %25, %26 : vector<16x32xf32>
    %cst_6 = arith.constant 0.00999999977 : f32
    %28 = vector.broadcast %cst_6 : f32 to vector<16x32xf32>
    %29 = arith.mulf %28, %25 : vector<16x32xf32>
    %30 = arith.select %27, %25, %29 : vector<16x32xi1>, vector<16x32xf32>
    %31 = arith.truncf %30 : vector<16x32xf32> to vector<16x32xbf16>
    %c0_7 = arith.constant 0 : index
    %c0_8 = arith.constant 0 : index
    %32 = vector.load %arg4[%c0_7, %c0_8] : memref<16x32xbf16, #tpu.memory_space<vmem>>, vector<16x32xbf16>
    tpu.vector_store %arg4[%c0_7, %c0_8], %31 {strides = array<i32>} : memref<16x32xbf16, #tpu.memory_space<vmem>>, vector<16x32xbf16>,
    return
  }
  func.func @transform_0(%arg0: i32) -> (i32, i32) {
    %c0_i32 = arith.constant 0 : i32
    %c0_i32_0 = arith.constant 0 : i32
    return %c0_i32, %arg0 : i32, i32
  }
  func.func @transform_1(%arg0: i32) -> (i32, i32) {
    %c0_i32 = arith.constant 0 : i32
    %c0_i32_0 = arith.constant 0 : i32
    %c0_i32_1 = arith.constant 0 : i32
    return %c0_i32, %c0_i32_0 : i32, i32
  }
  func.func @transform_2(%arg0: i32) -> (i32, i32) {
    %c0_i32 = arith.constant 0 : i32
    %c0_i32_0 = arith.constant 0 : i32
    %c0_i32_1 = arith.constant 0 : i32
    return %c0_i32, %c0_i32_0 : i32, i32
  }
  func.func @transform_3(%arg0: i32) -> (i32, i32) {
    %c0_i32 = arith.constant 0 : i32
    %c0_i32_0 = arith.constant 0 : i32
    return %c0_i32, %arg0 : i32, i32
  }
}

module attributes {stable_mosaic.version = 11 : i64} {
  func.func @_dec_block_kernel(%arg0: i32, %arg1: memref<128x50xbf16, #tpu.memory_space<vmem>>, %arg2: memref<32x128xbf16, #tpu.memory_space<vmem>>, %arg3: memref<32x1xf32, #tpu.memory_space<vmem>>, %arg4: memref<32x50xbf16, #tpu.memory_space<vmem>>) attributes {dimension_semantics = [#tpu.dimension_semantics<parallel>], iteration_bounds = array<i64: 1>, scalar_prefetch = 0 : i64, scratch_operands = 0 : i64, tpu.core_type = #tpu.core_type<tc>, window_params = [{transform_indices = @transform_0, window_bounds = array<i64: 128, 50>}, {pipeline_mode = #tpu.pipeline_mode<synchronous>, transform_indices = @transform_1, window_bounds = array<i64: 32, 128>}, {pipeline_mode = #tpu.pipeline_mode<synchronous>, transform_indices = @transform_2, window_bounds = array<i64: 32, 1>}, {transform_indices = @transform_3, window_bounds = array<i64: 32, 50>}]} {
    %c0 = arith.constant 0 : index
    %c0_0 = arith.constant 0 : index
    %0 = vector.load %arg2[%c0, %c0_0] : memref<32x128xbf16, #tpu.memory_space<vmem>>, vector<32x128xbf16>
    %c0_1 = arith.constant 0 : index
    %c0_2 = arith.constant 0 : index
    %1 = vector.load %arg1[%c0_1, %c0_2] : memref<128x50xbf16, #tpu.memory_space<vmem>>, vector<128x50xbf16>
    %cst = arith.constant dense<0.000000e+00> : vector<32x50xf32>
    %2 = tpu.matmul %0, %1, %cst {dimension_numbers = #tpu.dot_dimension_numbers<[1], [0], [0], [1], [0, 0, 1, 1], [], []>} : vector<32x128xbf16>, vector<128x50xbf16>, vector<32x50xf32> -> vector<32x50xf32>
    %c0_3 = arith.constant 0 : index
    %c0_4 = arith.constant 0 : index
    %3 = vector.load %arg3[%c0_3, %c0_4] : memref<32x1xf32, #tpu.memory_space<vmem>>, vector<32x1xf32>
    %4 = vector.broadcast %3 : vector<32x1xf32> to vector<32x50xf32>
    %5 = arith.addf %2, %4 : vector<32x50xf32>
    %cst_5 = arith.constant 0.000000e+00 : f32
    %6 = vector.broadcast %cst_5 : f32 to vector<32x50xf32>
    %7 = arith.maximumf %5, %6 : vector<32x50xf32>
    %8 = arith.truncf %7 : vector<32x50xf32> to vector<32x50xbf16>
    %c0_6 = arith.constant 0 : index
    %c0_7 = arith.constant 0 : index
    %9 = vector.load %arg4[%c0_6, %c0_7] : memref<32x50xbf16, #tpu.memory_space<vmem>>, vector<32x50xbf16>
    tpu.vector_store %arg4[%c0_6, %c0_7], %8 {strides = array<i32>} : memref<32x50xbf16, #tpu.memory_space<vmem>>, vector<32x50xbf16>,
    return
  }
  func.func @transform_0(%arg0: i32) -> (i32, i32) {
    %c0_i32 = arith.constant 0 : i32
    %c0_i32_0 = arith.constant 0 : i32
    return %c0_i32, %arg0 : i32, i32
  }
  func.func @transform_1(%arg0: i32) -> (i32, i32) {
    %c0_i32 = arith.constant 0 : i32
    %c0_i32_0 = arith.constant 0 : i32
    %c0_i32_1 = arith.constant 0 : i32
    return %c0_i32, %c0_i32_0 : i32, i32
  }
  func.func @transform_2(%arg0: i32) -> (i32, i32) {
    %c0_i32 = arith.constant 0 : i32
    %c0_i32_0 = arith.constant 0 : i32
    %c0_i32_1 = arith.constant 0 : i32
    return %c0_i32, %c0_i32_0 : i32, i32
  }
  func.func @transform_3(%arg0: i32) -> (i32, i32) {
    %c0_i32 = arith.constant 0 : i32
    %c0_i32_0 = arith.constant 0 : i32
    return %c0_i32, %arg0 : i32, i32
  }
}

module attributes {stable_mosaic.version = 11 : i64} {
  func.func @_dec_block_kernel(%arg0: i32, %arg1: memref<64x162xbf16, #tpu.memory_space<vmem>>, %arg2: memref<8x64xbf16, #tpu.memory_space<vmem>>, %arg3: memref<8x1xf32, #tpu.memory_space<vmem>>, %arg4: memref<8x162xf32, #tpu.memory_space<vmem>>) attributes {dimension_semantics = [#tpu.dimension_semantics<parallel>], iteration_bounds = array<i64: 1>, scalar_prefetch = 0 : i64, scratch_operands = 0 : i64, tpu.core_type = #tpu.core_type<tc>, window_params = [{transform_indices = @transform_0, window_bounds = array<i64: 64, 162>}, {pipeline_mode = #tpu.pipeline_mode<synchronous>, transform_indices = @transform_1, window_bounds = array<i64: 8, 64>}, {pipeline_mode = #tpu.pipeline_mode<synchronous>, transform_indices = @transform_2, window_bounds = array<i64: 8, 1>}, {transform_indices = @transform_3, window_bounds = array<i64: 8, 162>}]} {
    %c0 = arith.constant 0 : index
    %c0_0 = arith.constant 0 : index
    %0 = vector.load %arg2[%c0, %c0_0] : memref<8x64xbf16, #tpu.memory_space<vmem>>, vector<8x64xbf16>
    %c0_1 = arith.constant 0 : index
    %c0_2 = arith.constant 0 : index
    %1 = vector.load %arg1[%c0_1, %c0_2] : memref<64x162xbf16, #tpu.memory_space<vmem>>, vector<64x162xbf16>
    %cst = arith.constant dense<0.000000e+00> : vector<8x162xf32>
    %2 = tpu.matmul %0, %1, %cst {dimension_numbers = #tpu.dot_dimension_numbers<[1], [0], [0], [1], [0, 0, 1, 1], [], []>} : vector<8x64xbf16>, vector<64x162xbf16>, vector<8x162xf32> -> vector<8x162xf32>
    %c0_3 = arith.constant 0 : index
    %c0_4 = arith.constant 0 : index
    %3 = vector.load %arg3[%c0_3, %c0_4] : memref<8x1xf32, #tpu.memory_space<vmem>>, vector<8x1xf32>
    %4 = vector.broadcast %3 : vector<8x1xf32> to vector<8x162xf32>
    %5 = arith.addf %2, %4 : vector<8x162xf32>
    %6 = arith.negf %5 : vector<8x162xf32>
    %7 = math.exp %6 : vector<8x162xf32>
    %cst_5 = arith.constant 1.000000e+00 : f32
    %8 = vector.broadcast %cst_5 : f32 to vector<8x162xf32>
    %9 = arith.addf %8, %7 : vector<8x162xf32>
    %10 = arith.divf %8, %9 : vector<8x162xf32>
    %c0_6 = arith.constant 0 : index
    %c0_7 = arith.constant 0 : index
    %11 = vector.load %arg4[%c0_6, %c0_7] : memref<8x162xf32, #tpu.memory_space<vmem>>, vector<8x162xf32>
    tpu.vector_store %arg4[%c0_6, %c0_7], %10 {strides = array<i32>} : memref<8x162xf32, #tpu.memory_space<vmem>>, vector<8x162xf32>,
    return
  }
  func.func @transform_0(%arg0: i32) -> (i32, i32) {
    %c0_i32 = arith.constant 0 : i32
    %c0_i32_0 = arith.constant 0 : i32
    return %c0_i32, %arg0 : i32, i32
  }
  func.func @transform_1(%arg0: i32) -> (i32, i32) {
    %c0_i32 = arith.constant 0 : i32
    %c0_i32_0 = arith.constant 0 : i32
    %c0_i32_1 = arith.constant 0 : i32
    return %c0_i32, %c0_i32_0 : i32, i32
  }
  func.func @transform_2(%arg0: i32) -> (i32, i32) {
    %c0_i32 = arith.constant 0 : i32
    %c0_i32_0 = arith.constant 0 : i32
    %c0_i32_1 = arith.constant 0 : i32
    return %c0_i32, %c0_i32_0 : i32, i32
  }
  func.func @transform_3(%arg0: i32) -> (i32, i32) {
    %c0_i32 = arith.constant 0 : i32
    %c0_i32_0 = arith.constant 0 : i32
    return %c0_i32, %arg0 : i32, i32
  }
}

</mosaic_0001>

<bundles_post_ra>
// kernel: _lambda_.4
= control target key start
LH: loop header
LB: loop body
LE: loop exit
PB: predicated region body
PF: predicated region fallthrough
CT: control target
= control target key end

     0   :  { %v106_v0 = vmov 0   ;;  %v107_v2 = vmov 2   ;;  %vm32_vm0 = vcmask 261120   ;;  %v108_v6 = vmov 1   ;;  %s145_s2 = inlined_call_operand.vmem [shape: f32[8,4], index: 2, kind: input, shape index: {}]   ;;  %s146_s0 = inlined_call_operand.vmem [shape: bf16[32,128], index: 0, kind: input, shape index: {}]   ;;  %s147_s1 = inlined_call_operand.vmem [shape: bf16[8,32], index: 1, kind: input, shape index: {}]   ;;  %s148_s3 = inlined_call_operand.vmem [shape: bf16[8,128], index: 3, kind: output, shape index: {}]  }
   0x1   :  { %101 = vset.pattern.permute.xlu0 %v106_v0  ;;  %v49_v1 = vld [vmem:[%s145_s2] sm:$0xff]  ;;  %103 = vset.pattern.permute.xlu1 %v107_v2  ;;  %v96_v3 = vld [vmem:[%s146_s0 + $0x8] sm:$0xff]  ;;  %v109_v7 = vmov 3   ;;  %v50_v10 = vlaneseq }
   0x2   :  { %58 = vperm.xlu0 %101, %v49_v1   ;;  %67 = vperm.xlu1 %103, %v49_v1   ;;  %v95_v4 = vld [vmem:[%s146_s0] sm:$0xff] }
   0x3   :  { %42 = vmatpush.bf16.msra.mxu0 %v96_v3  ;;  %v15_v5 = vld [vmem:[%s147_s1] sm:$0xf]  ;;  %v51_v11 = vand.u32 127, %v50_v10 }
   0x5   :  { %vm55_vm1 = vcmp.lt.s32.totalorder %v51_v11, 64 }
   0x7   :  { %43 = vmatpush.bf16.msra.mxu0 %v95_v4 }
   0xa   :  { %102 = vset.pattern.permute.xlu0 %v108_v6  ;;  %94 = vmatmul.msk.bf16.vlgmr.msra.gmra.mxu0 %vm32_vm0, %v15_v5 }
   0xb   :  { %62 = vperm.xlu0 %102, %v49_v1   ;;  %104 = vset.pattern.permute.xlu1 %v109_v7 }
   0xc   :  { %71 = vperm.xlu1 %104, %v49_v1  }
  0x13   :  { %105 = vset.pattern.permute.xlu0 %v109_v7 }
  0x74   :  { %v59_v8 = vpop.permute.xlu0 %58  ;;  %v68_v9 = vpop.permute.xlu1 %67 }
  0x7d   :  { %v63_v12 = vpop.permute.xlu0 %62 }
  0x7e   :  { %v72_v13 = vpop.permute.xlu1 %71  ;;  %v65_v15 = vsel %vm55_vm1, %v59_v8, %v63_v12 }
  0x7f   :  { %v74_v17 = vsel %vm55_vm1, %v68_v9, %v72_v13 }
  0x87   :  { %v45_v14 = vpop.f32.mrf.mxu0 }
  0x88   :  { %v75_v16 = vmul.f32 %v65_v15, %v45_v14 }
  0x8a   :  { %v76_v18 = vadd.f32 %v75_v16, %v74_v17 }
  0x8c   :  { %vm77_vm2 = vcmp.ge.f32.partialorder %v76_v18, 0.0  ;;  %v78_v19 = vmul.f32 0.01, %v76_v18 }
  0x8e   :  { %v79_v20 = vsel %vm77_vm2, %v76_v18, %v78_v19 }
  0x8f   :  { %v80_v21 = vpack.c.bf16 %v79_v20, %v79_v20  ;;  %v47_v22 = vpop.f32.mrf.mxu0 }
  0x91   :  { %81 = vst [vmem:[%s148_s3] sm:$0xf] %v80_v21 }

// kernel: _lambda_.5
= control target key start
LH: loop header
LB: loop body
LE: loop exit
PB: predicated region body
PF: predicated region fallthrough
CT: control target
= control target key end

     0   :  { %v219_v1 = vmov 1   ;;  %v220_v2 = vmov 0   ;;  %v221_v5 = vmov 2   ;;  %v222_v11 = vmov 3   ;;  %s286_s0 = inlined_call_operand.vmem [shape: bf16[128,32], index: 0, kind: input, shape index: {}]   ;;  %s287_s2 = inlined_call_operand.vmem [shape: f32[16,4], index: 2, kind: input, shape index: {}]   ;;  %s288_s1 = inlined_call_operand.vmem [shape: bf16[16,128], index: 1, kind: input, shape index: {}]   ;;  %s289_s3 = inlined_call_operand.vmem [shape: bf16[16,32], index: 3, kind: output, shape index: {}]  }
   0x1   :  { %v209_v0 = vld [vmem:[%s286_s0 + $0x38] sm:$0xff]  ;;  %215 = vset.pattern.permute.xlu1 %v219_v1  ;;  %214 = vset.pattern.permute.xlu0 %v220_v2  ;;  %v208_v3 = vld [vmem:[%s286_s0 + $0x30] sm:$0xff]  ;;  %v100_v4 = vld [vmem:[%s287_s2] sm:$0xff]  ;;  %v102_v18 = vlaneseq  ;;  %vm158_vm2 = vcmask 257024  }
   0x2   :  { %86 = vmatpush.bf16.msra.mxu0 %v209_v0  ;;  %216 = vset.pattern.permute.xlu2 %v221_v5  ;;  %v207_v6 = vld [vmem:[%s286_s0 + $0x28] sm:$0xff]  ;;  %v206_v8 = vld [vmem:[%s286_s0 + $0x20] sm:$0xff]  ;;  %v205_v9 = vld [vmem:[%s286_s0 + $0x18] sm:$0xff] }
   0x3   :  { %119 = vperm.xlu1 %215, %v100_v4   ;;  %110 = vperm.xlu0 %214, %v100_v4   ;;  %v101_v7 = vld [vmem:[%s287_s2 + $0x8] sm:$0xff]  ;;  %v204_v10 = vld [vmem:[%s286_s0 + $0x10] sm:$0xff]  ;;  %v202_v13 = vld [vmem:[%s286_s0] sm:$0xff]  ;;  %v103_v19 = vand.u32 127, %v102_v18 }
   0x4   :  { %129 = vperm.xlu2 %216, %v100_v4   ;;  %v203_v12 = vld [vmem:[%s286_s0 + $0x8] sm:$0xff]  ;;  %v201_v14 = vld [vmem:[%s288_s1] sm:$0xff] }
   0x5   :  { %vm107_vm0 = vcmp.lt.s32.totalorder %v103_v19, 16 }
   0x6   :  { %87 = vmatpush.bf16.msra.mxu0 %v208_v3 }
   0xa   :  { %88 = vmatpush.bf16.msra.mxu0 %v207_v6 }
   0xb   :  { %123 = vperm.xlu1 %215, %v101_v7   ;;  %115 = vperm.xlu0 %214, %v101_v7  }
   0xc   :  { %133 = vperm.xlu2 %216, %v101_v7  }
   0xe   :  { %89 = vmatpush.bf16.msra.mxu0 %v206_v8 }
  0x12   :  { %90 = vmatpush.bf16.msra.mxu0 %v205_v9 }
  0x13   :  { %218 = vset.pattern.permute.xlu1 %v222_v11  ;;  %217 = vset.pattern.permute.xlu0 %v222_v11 }
  0x14   :  { %141 = vperm.xlu1 %218, %v101_v7   ;;  %137 = vperm.xlu0 %217, %v100_v4  }
  0x16   :  { %91 = vmatpush.bf16.msra.mxu0 %v204_v10 }
  0x1a   :  { %92 = vmatpush.bf16.msra.mxu0 %v203_v12 }
  0x1e   :  { %93 = vmatpush.bf16.msra.mxu0 %v202_v13 }
  0x21   :  { %94 = vmatmul.bf16.vlgmr.msra.gmra.mxu0 %v201_v14 }
  0x5e   :  { %v130_v20 = vpop.permute.xlu2 %129 }
  0x66   :  { %v134_v29 = vpop.permute.xlu2 %133 }
  0x75   :  { %v111_v15 = vpop.permute.xlu0 %110  ;;  %v120_v16 = vpop.permute.xlu1 %119 }
  0x76   :  { %v126_v24 = vsel %vm107_vm0, %v111_v15, %v120_v16 }
  0x7d   :  { %v116_v17 = vpop.permute.xlu0 %115  ;;  %v124_v21 = vpop.permute.xlu1 %123 }
  0x7e   :  { %v127_v34 = vsel %vm107_vm0, %v116_v17, %v124_v21 }
  0x86   :  { %v138_v22 = vpop.permute.xlu0 %137  ;;  %v142_v30 = vpop.permute.xlu1 %141 }
  0x87   :  { %v144_v25 = vsel %vm107_vm0, %v130_v20, %v138_v22  ;;  %v145_v36 = vsel %vm107_vm0, %v134_v29, %v142_v30 }
  0x9e   :  { %v95_v23 = vpop.f32.mrf.mxu0 }
  0x9f   :  { %v146_v26 = vmul.f32 %v126_v24, %v95_v23 }
  0xa1   :  { %v148_v27 = vadd.f32 %v146_v26, %v144_v25 }
  0xa3   :  { %vm150_vm1 = vcmp.ge.f32.partialorder %v148_v27, 0.0  ;;  %v152_v28 = vmul.f32 0.01, %v148_v27 }
  0xa5   :  { %v154_v31 = vsel %vm150_vm1, %v148_v27, %v152_v28 }
  0xa6   :  { %v156_v32 = vpack.c.bf16 %v154_v31, %v154_v31  ;;  %v97_v33 = vpop.f32.mrf.mxu0 }
  0xa7   :  { %v147_v35 = vmul.f32 %v127_v34, %v97_v33 }
  0xa8   :  { %159 = vst.msk [vmem:[%s289_s3] sm:$0xf] %vm158_vm2, %v156_v32 }
  0xa9   :  { %v149_v37 = vadd.f32 %v147_v35, %v145_v36 }
  0xab   :  { %vm151_vm3 = vcmp.ge.f32.partialorder %v149_v37, 0.0  ;;  %v153_v38 = vmul.f32 0.01, %v149_v37 }
  0xad   :  { %v155_v39 = vsel %vm151_vm3, %v149_v37, %v153_v38 }
  0xae   :  { %v157_v40 = vpack.c.bf16 %v155_v39, %v155_v39 }
  0xb0   :  { %160 = vst.msk [vmem:[%s289_s3 + $0x4] sm:$0xf] %vm158_vm2, %v157_v40 }

// kernel: _lambda_.6
= control target key start
LH: loop header
LB: loop body
LE: loop exit
PB: predicated region body
PF: predicated region fallthrough
CT: control target
= control target key end

     0   :  { %v215_v2 = vmov 0   ;;  %vm145_vm0 = vcmask 404480   ;;  %s294_s0 = inlined_call_operand.vmem [shape: bf16[128,50], index: 0, kind: input, shape index: {}]   ;;  %s295_s2 = inlined_call_operand.vmem [shape: f32[32,1], index: 2, kind: input, shape index: {}]   ;;  %s296_s1 = inlined_call_operand.vmem [shape: bf16[32,128], index: 1, kind: input, shape index: {}]   ;;  %s297_s3 = inlined_call_operand.vmem [shape: bf16[32,50], index: 3, kind: output, shape index: {}]  }
   0x1   :  { %v203_v0 = vld [vmem:[%s294_s0 + $0x38] sm:$0xff]  ;;  %v202_v1 = vld [vmem:[%s294_s0 + $0x30] sm:$0xff]  ;;  %214 = vset.pattern.permute.xlu1 %v215_v2  ;;  %213 = vset.pattern.permute.xlu0 %v215_v2  ;;  %v34_v4 = vld [vmem:[%s295_s2] sm:$0xff] }
   0x2   :  { %118 = vmatpush.bf16.msra.mxu0 %v203_v0  ;;  %204 = vmatpush.bf16.msra.mxu1 %v203_v0  ;;  %v36_v3 = vld [vmem:[%s295_s2 + $0x10] sm:$0xff]  ;;  %v201_v5 = vld [vmem:[%s294_s0 + $0x28] sm:$0xff]  ;;  %v37_v6 = vld [vmem:[%s295_s2 + $0x18] sm:$0xff] }
   0x3   :  { %50 = vperm.xlu1 %214, %v36_v3   ;;  %40 = vperm.xlu0 %213, %v34_v4   ;;  %v35_v7 = vld [vmem:[%s295_s2 + $0x8] sm:$0xff]  ;;  %v200_v8 = vld [vmem:[%s294_s0 + $0x20] sm:$0xff]  ;;  %v199_v9 = vld [vmem:[%s294_s0 + $0x18] sm:$0xff] }
   0x4   :  { %v198_v10 = vld [vmem:[%s294_s0 + $0x10] sm:$0xff]  ;;  %v197_v11 = vld [vmem:[%s294_s0 + $0x8] sm:$0xff]  ;;  %v196_v12 = vld [vmem:[%s294_s0] sm:$0xff] }
   0x5   :  { %v194_v13 = vld [vmem:[%s296_s1] sm:$0xff]  ;;  %v195_v14 = vld [vmem:[%s296_s1 + $0x8] sm:$0xff] }
   0x6   :  { %119 = vmatpush.bf16.msra.mxu0 %v202_v1  ;;  %205 = vmatpush.bf16.msra.mxu1 %v202_v1 }
   0xa   :  { %120 = vmatpush.bf16.msra.mxu0 %v201_v5  ;;  %206 = vmatpush.bf16.msra.mxu1 %v201_v5 }
   0xb   :  { %55 = vperm.xlu1 %214, %v37_v6   ;;  %45 = vperm.xlu0 %213, %v35_v7  }
   0xe   :  { %121 = vmatpush.bf16.msra.mxu0 %v200_v8  ;;  %207 = vmatpush.bf16.msra.mxu1 %v200_v8 }
  0x12   :  { %122 = vmatpush.bf16.msra.mxu0 %v199_v9  ;;  %208 = vmatpush.bf16.msra.mxu1 %v199_v9 }
  0x16   :  { %123 = vmatpush.bf16.msra.mxu0 %v198_v10  ;;  %209 = vmatpush.bf16.msra.mxu1 %v198_v10 }
  0x1a   :  { %124 = vmatpush.bf16.msra.mxu0 %v197_v11  ;;  %210 = vmatpush.bf16.msra.mxu1 %v197_v11 }
  0x1e   :  { %125 = vmatpush.bf16.msra.mxu0 %v196_v12  ;;  %211 = vmatpush.bf16.msra.mxu1 %v196_v12 }
  0x21   :  { %126 = vmatmul.bf16.vlgmr.msra.gmra.mxu0 %v194_v13  ;;  %131 = vmatmul.bf16.vlgmr.msra.gmra.mxu1 %v195_v14 }
  0x75   :  { %v51_v15 = vpop.permute.xlu1 %50  ;;  %v41_v16 = vpop.permute.xlu0 %40 }
  0x7d   :  { %v56_v25 = vpop.permute.xlu1 %55  ;;  %v46_v26 = vpop.permute.xlu0 %45 }
  0x9e   :  { %v127_v17 = vpop.f32.mrf.mxu0  ;;  %v132_v18 = vpop.f32.mrf.mxu1 }
  0x9f   :  { %v128_v19 = vadd.f32 %v127_v17, %v41_v16  ;;  %v133_v20 = vadd.f32 %v132_v18, %v51_v15 }
  0xa1   :  { %v137_v21 = vmax.f32 %v128_v19, 0.0  ;;  %v139_v22 = vmax.f32 %v133_v20, 0.0 }
  0xa3   :  { %v141_v23 = vpack.c.bf16 %v137_v21, %v137_v21  ;;  %v143_v24 = vpack.c.bf16 %v139_v22, %v139_v22 }
  0xa5   :  { %146 = vst.msk [vmem:[%s297_s3] sm:$0xf] %vm145_vm0, %v141_v23 }
  0xa6   :  { %148 = vst.msk [vmem:[%s297_s3 + $0x8] sm:$0xf] %vm145_vm0, %v143_v24  ;;  %v129_v27 = vpop.f32.mrf.mxu0  ;;  %v134_v28 = vpop.f32.mrf.mxu1 }
  0xa7   :  { %v130_v29 = vadd.f32 %v129_v27, %v46_v26  ;;  %v135_v30 = vadd.f32 %v134_v28, %v56_v25 }
  0xa9   :  { %v138_v31 = vmax.f32 %v130_v29, 0.0  ;;  %v140_v32 = vmax.f32 %v135_v30, 0.0 }
  0xab   :  { %v142_v33 = vpack.c.bf16 %v138_v31, %v138_v31  ;;  %v144_v34 = vpack.c.bf16 %v140_v32, %v140_v32 }
  0xad   :  { %147 = vst.msk [vmem:[%s297_s3 + $0x4] sm:$0xf] %vm145_vm0, %v142_v33 }
  0xae   :  { %149 = vst.msk [vmem:[%s297_s3 + $0xc] sm:$0xf] %vm145_vm0, %v144_v34 }

// kernel: _lambda_.7
= control target key start
LH: loop header
LB: loop body
LE: loop exit
PB: predicated region body
PF: predicated region fallthrough
CT: control target
= control target key end

     0   :  { %v199_v3 = vmov 0   ;;  %vm70_vm0 = vcmask 523264   ;;  %vm139_vm8 = vcmask 277504   ;;  %s280_s0 = inlined_call_operand.vmem [shape: bf16[64,162], index: 0, kind: input, shape index: {}]   ;;  %s281_s2 = inlined_call_operand.vmem [shape: f32[8,1], index: 2, kind: input, shape index: {}]   ;;  %s282_s1 = inlined_call_operand.vmem [shape: bf16[8,64], index: 1, kind: input, shape index: {}]   ;;  %s283_s3 = inlined_call_operand.vmem [shape: f32[8,162], index: 3, kind: output, shape index: {}]  }
   0x1   :  { %v171_v0 = vld [vmem:[%s280_s0 + $0x30] sm:$0xf]  ;;  %v188_v1 = vld [vmem:[%s280_s0 + $0x34] sm:$0xf0]  ;;  %v187_v2 = vld [vmem:[%s280_s0 + $0x34] sm:$0xf]  ;;  %190 = vset.pattern.permute.xlu0 %v199_v3 }
   0x2   :  { %v172_v4 = vor.u32 %v188_v1, %v171_v0  ;;  %v173_v5 = vld [vmem:[%s280_s0 + $0x38] sm:$0xf0]  ;;  %v163_v6 = vld [vmem:[%s280_s0 + $0x20] sm:$0xf]  ;;  %v186_v7 = vld [vmem:[%s280_s0 + $0x24] sm:$0xf0] }
   0x3   :  { %v176_v8 = vor.u32 %v187_v2, %v173_v5  ;;  %v185_v9 = vld [vmem:[%s280_s0 + $0x24] sm:$0xf]  ;;  %v165_v10 = vld [vmem:[%s280_s0 + $0x28] sm:$0xf0]  ;;  %v164_v11 = vor.u32 %v186_v7, %v163_v6  ;;  %v155_v13 = vld [vmem:[%s280_s0 + $0x10] sm:$0xf] }
   0x4   :  { %78 = vmatpush.bf16.msra.mxu0 %v172_v4  ;;  %v168_v12 = vor.u32 %v185_v9, %v165_v10  ;;  %v184_v14 = vld [vmem:[%s280_s0 + $0x14] sm:$0xf0]  ;;  %v183_v15 = vld [vmem:[%s280_s0 + $0x14] sm:$0xf]  ;;  %v157_v16 = vld [vmem:[%s280_s0 + $0x18] sm:$0xf0] }
   0x5   :  { %91 = vmatpush.bf16.msra.mxu1 %v176_v8  ;;  %v24_v17 = vld [vmem:[%s281_s2] sm:$0xff]  ;;  %v156_v18 = vor.u32 %v184_v14, %v155_v13  ;;  %v160_v19 = vor.u32 %v183_v15, %v157_v16  ;;  %v182_v21 = vld [vmem:[%s280_s0 + $0x4] sm:$0xf0]  ;;  %v149_v23 = vld [vmem:[%s280_s0 + $0x8] sm:$0xf0] }
   0x6   :  { %27 = vperm.xlu0 %190, %v24_v17   ;;  %v147_v20 = vld [vmem:[%s280_s0] sm:$0xf]  ;;  %v181_v22 = vld [vmem:[%s280_s0 + $0x4] sm:$0xf] }
   0x7   :  { %v148_v24 = vor.u32 %v182_v21, %v147_v20  ;;  %v152_v25 = vor.u32 %v181_v22, %v149_v23  ;;  %v15_v26 = vld [vmem:[%s282_s1] sm:$0xf] }
   0x8   :  { %79 = vmatpush.bf16.msra.mxu0 %v164_v11 }
   0x9   :  { %92 = vmatpush.bf16.msra.mxu1 %v168_v12 }
   0xc   :  { %80 = vmatpush.bf16.msra.mxu0 %v156_v18 }
   0xd   :  { %93 = vmatpush.bf16.msra.mxu1 %v160_v19 }
  0x10   :  { %81 = vmatpush.bf16.msra.mxu0 %v148_v24 }
  0x11   :  { %94 = vmatpush.bf16.msra.mxu1 %v152_v25 }
  0x13   :  { %177 = vmatmul.msk.bf16.vlgmr.msra.gmra.mxu0 %vm70_vm0, %v15_v26 }
  0x14   :  { %178 = vmatmul.msk.bf16.vlgmr.msra.gmra.mxu1 %vm70_vm0, %v15_v26 }
  0x78   :  { %v28_v27 = vpop.permute.xlu0 %27 }
  0x90   :  { %v83_v28 = vpop.f32.mrf.mxu0 }
  0x91   :  { %v84_v29 = vadd.f32 %v83_v28, %v28_v27  ;;  %v96_v30 = vpop.f32.mrf.mxu1 }
  0x92   :  { %v97_v31 = vadd.f32 %v96_v30, %v28_v27 }
  0x93   :  { %v179_v32 = vmul.f32 -1.442695, %v84_v29 }
  0x94   :  { %v180_v33 = vmul.f32 -1.442695, %v97_v31 }
  0x95   :  { %191 = vpow2.f32 %v179_v32 }
  0x96   :  { %193 = vpow2.f32 %v180_v33 }
  0x98   :  { %v85_v34 = vpop.f32.mrf.mxu0 }
  0x99   :  { %v98_v35 = vpop.f32.mrf.mxu1 }
  0x9b   :  { %v192_v36 = vpop.eup %191 }
  0x9c   :  { %v194_v37 = vpop.eup %193  ;;  %v106_v38 = vadd.f32 1.0, %v192_v36 }
  0x9d   :  { %v107_v39 = vadd.f32 1.0, %v194_v37 }
  0x9e   :  { %195 = vrcp.f32 %v106_v38  ;;  %v119_v45 = vand.u32 2147483648, %v106_v38  ;;  %v117_v48 = vand.u32 2147483647, %v106_v38  ;;  %vm113_vm3 = vweird.f32 %v106_v38 }
  0x9f   :  { %197 = vrcp.f32 %v107_v39  ;;  %v134_v49 = vand.u32 2147483648, %v107_v39  ;;  %v132_v51 = vand.u32 2147483647, %v107_v39  ;;  %vm128_vm5 = vweird.f32 %v107_v39 }
  0xa0   :  { %v120_v53 = vor.u32 1.1754944e-38, %v119_v45  ;;  %vm118_vm6 = vcmp.eq.f32.partialorder %v117_v48, 8.507059e+37 }
  0xa1   :  { %v135_v56 = vor.u32 1.1754944e-38, %v134_v49  ;;  %vm133_vm9 = vcmp.eq.f32.partialorder %v132_v51, 8.507059e+37 }
  0xa4   :  { %v196_v40 = vpop.eup %195 }
  0xa5   :  { %v198_v41 = vpop.eup %197  ;;  %v109_v42 = vmul.f32 %v196_v40, %v106_v38  ;;  %vm114_vm1 = vweird.f32 %v196_v40 }
  0xa6   :  { %v124_v43 = vmul.f32 %v198_v41, %v107_v39  ;;  %vm129_vm2 = vweird.f32 %v198_v41  ;;  %vm115_vm4 = vmor %vm113_vm3, %vm114_vm1 }
  0xa7   :  { %v110_v44 = vsub.f32 1.0, %v109_v42  ;;  %vm130_vm7 = vmor %vm128_vm5, %vm129_vm2 }
  0xa8   :  { %v125_v46 = vsub.f32 1.0, %v124_v43 }
  0xa9   :  { %v111_v47 = vmul.f32 %v196_v40, %v110_v44 }
  0xaa   :  { %v126_v50 = vmul.f32 %v198_v41, %v125_v46 }
  0xab   :  { %v112_v52 = vadd.f32 %v196_v40, %v111_v47 }
  0xac   :  { %v127_v54 = vadd.f32 %v198_v41, %v126_v50 }
  0xad   :  { %v116_v55 = vsel %vm115_vm4, %v196_v40, %v112_v52 }
  0xae   :  { %v121_v57 = vsel %vm118_vm6, %v120_v53, %v116_v55  ;;  %v131_v58 = vsel %vm130_vm7, %v198_v41, %v127_v54 }
  0xaf   :  { %138 = vst [vmem:[%s283_s3] sm:$0xff] %v121_v57  ;;  %v136_v59 = vsel %vm133_vm9, %v135_v56, %v131_v58 }
  0xb0   :  { %140 = vst.msk [vmem:[%s283_s3 + $0x8] sm:$0xff] %vm139_vm8, %v136_v59 }

</bundles_post_ra>
